<compile_context>
chip_gen: v7x
topology: tpu7x:2x2x1
jax: 0.10.0
libtpu: 0.0.40
codegen_flags: <defaults>
</compile_context>

<pallas_src>
import functools

import jax
import jax.numpy as jnp
from jax.experimental import pallas as pl
from jax.experimental.pallas import tpu as pltpu


def _anova_dp_kernel(x_ref, o_ref, *, order, num_fields, embed_dim, reduce_sum):
    # x_ref: (TB, F*D) VMEM tile with fields flattened into the lane axis, so
    # x_ref[:, j*D:(j+1)*D] is a cheap lane slice (no sublane relayout).
    tb = x_ref.shape[0]
    d = embed_dim

    # DP state: a[t] == A^t(j) for the current prefix length j, each (TB, D),
    # accumulated in f32 (matches the torch code, which builds its DP in float32).
    a = [jnp.ones((tb, d), jnp.float32)]
    a += [jnp.zeros((tb, d), jnp.float32) for _ in range(order)]

    # num_fields is static, so this loop fully unrolls; each iteration is
    # `order` FMAs over a (TB, D) tile.
    for j in range(num_fields):
        xj = x_ref[:, j * d:(j + 1) * d].astype(jnp.float32)
        # Descending t so a[t-1] is still the value for prefix length j.
        for t in range(order, 0, -1):
            a[t] = a[t] + xj * a[t - 1]

    result = a[order]
    if reduce_sum:
        o_ref[...] = jnp.sum(result, axis=-1, keepdims=True).astype(o_ref.dtype)
    else:
        o_ref[...] = result.astype(o_ref.dtype)


def _pick_batch_tile(batch, per_row_bytes, budget_bytes):
    """Largest batch tile that (a) keeps the pipelined buffers + DP state within
    the VMEM budget, (b) is 8-aligned (unless it spans the whole batch), and
    (c) prefers a divisor of `batch` so there is no ragged final block."""
    target = max(8, budget_bytes // max(per_row_bytes, 1))
    if batch <= target:
        return batch
    tb = max(8, (min(target, 1024) // 8) * 8)
    # Prefer an 8-aligned divisor of the batch (no partial block).
    t = tb
    while t >= 8:
        if batch % t == 0:
            return t
        t -= 8
    # No 8-aligned divisor; a ragged final block is still correct (per-row DP,
    # out-of-range output rows are dropped by Pallas).
    return tb


def anova_kernel(x, order, reduce_sum=True, *, batch_tile=None,
                 vmem_budget_bytes=20 << 20):
    """ANOVA kernel forward. x: (batch, num_fields, embed_dim)."""
    assert x.ndim == 3, "expected (batch, num_fields, embed_dim)"
    assert order >= 1, "order must be >= 1 (matches the torch module's loop)"
    b, num_fields, d = x.shape
    out_d = 1 if reduce_sum else d
    isz = jnp.dtype(x.dtype).itemsize

    # Free, contiguous flatten of the trailing dims: (B, F, D) -> (B, F*D).
    x2 = x.reshape(b, num_fields * d)

    # Per-batch-row VMEM bytes: double-buffered input + output tiles + DP state.
    per_row_bytes = 2 * num_fields * d * isz + 2 * out_d * 4 + (order + 1) * d * 4
    tb = batch_tile if batch_tile is not None else _pick_batch_tile(
        b, per_row_bytes, vmem_budget_bytes)
    tb = min(tb, b)
    grid = (pl.cdiv(b, tb),)

    kernel = functools.partial(
        _anova_dp_kernel, order=order, num_fields=num_fields,
        embed_dim=d, reduce_sum=reduce_sum)

    # Pipeline buffers + DP state, with headroom; capped below v7x usable VMEM.
    needed = tb * per_row_bytes
    vmem_limit = int(min(max(needed + (8 << 20), 32 << 20), 48 << 20))

    return pl.pallas_call(
        kernel,
        out_shape=jax.ShapeDtypeStruct((b, out_d), jnp.float32),
        grid=grid,
        in_specs=[pl.BlockSpec((tb, num_fields * d), lambda i: (i, 0))],
        out_specs=pl.BlockSpec((tb, out_d), lambda i: (i, 0)),
        compiler_params=pltpu.CompilerParams(
            dimension_semantics=("parallel",),
            vmem_limit_bytes=vmem_limit,
        ),
    )(x2)


def _anova_reference(x, order, reduce_sum=True):
    """Pure-JAX mirror of the torch AnovaKernel.forward (for checking)."""
    b, num_fields, d = x.shape
    a_prev = jnp.ones((b, num_fields + 1, d), jnp.float32)
    for t in range(order):
        a = jnp.zeros((b, num_fields + 1, d), jnp.float32)
        a = a.at[:, t + 1:, :].add(
            x[:, t:, :].astype(jnp.float32) * a_prev[:, t:-1, :])
        a = jnp.cumsum(a, axis=1)
        a_prev = a
    if reduce_sum:
        return jnp.sum(a_prev[:, -1, :], axis=-1, keepdims=True)
    return a_prev[:, -1, :]


if __name__ == "__main__":
    key = jax.random.PRNGKey(0)
    B, F, D = 2, 8, 32     # (batch_size, num_fields, embed_dim)
    ORDER = 2
    x = jax.random.normal(key, (B, F, D), dtype=jnp.float32)

    # reduce_sum=True path (module default): output (B, 1)
    y = anova_kernel(x, ORDER, reduce_sum=True)
    y = jax.block_until_ready(y)
    ref = _anova_reference(x, ORDER, reduce_sum=True)
    assert y.shape == (B, 1)
    assert jnp.allclose(y, ref, rtol=1e-5, atol=1e-4), "reduce_sum=True mismatch"

    # reduce_sum=False path: output (B, D)
    y2 = anova_kernel(x, ORDER, reduce_sum=False)
    y2 = jax.block_until_ready(y2)
    ref2 = _anova_reference(x, ORDER, reduce_sum=False)
    assert y2.shape == (B, D)
    assert jnp.allclose(y2, ref2, rtol=1e-5, atol=1e-4), "reduce_sum=False mismatch"

    print("KERNEL_OK")
</pallas_src>

<mosaic_0001>
module attributes {stable_mosaic.version = 11 : i64} {
  func.func @_anova_dp_kernel(%arg0: i32, %arg1: memref<2x256xf32, #tpu.memory_space<vmem>>, %arg2: memref<2x1xf32, #tpu.memory_space<vmem>>) attributes {dimension_semantics = [#tpu.dimension_semantics<parallel>], iteration_bounds = array<i64: 1>, scalar_prefetch = 0 : i64, scratch_operands = 0 : i64, tpu.core_type = #tpu.core_type<tc>, window_params = [{transform_indices = @transform_0, window_bounds = array<i64: 2, 256>}, {transform_indices = @transform_1, window_bounds = array<i64: 2, 1>}]} {
    %cst = arith.constant 1.000000e+00 : f32
    %0 = vector.broadcast %cst : f32 to vector<2x32xf32>
    %cst_0 = arith.constant 0.000000e+00 : f32
    %1 = vector.broadcast %cst_0 : f32 to vector<2x32xf32>
    %cst_1 = arith.constant 0.000000e+00 : f32
    %2 = vector.broadcast %cst_1 : f32 to vector<2x32xf32>
    %c0 = arith.constant 0 : index
    %c0_2 = arith.constant 0 : index
    %3 = vector.load %arg1[%c0, %c0_2] : memref<2x256xf32, #tpu.memory_space<vmem>>, vector<2x32xf32>
    %4 = arith.mulf %3, %1 : vector<2x32xf32>
    %5 = arith.addf %2, %4 : vector<2x32xf32>
    %6 = arith.mulf %3, %0 : vector<2x32xf32>
    %7 = arith.addf %1, %6 : vector<2x32xf32>
    %c0_3 = arith.constant 0 : index
    %c32 = arith.constant 32 : index
    %8 = vector.load %arg1[%c0_3, %c32] : memref<2x256xf32, #tpu.memory_space<vmem>>, vector<2x32xf32>
    %9 = arith.mulf %8, %7 : vector<2x32xf32>
    %10 = arith.addf %5, %9 : vector<2x32xf32>
    %11 = arith.mulf %8, %0 : vector<2x32xf32>
    %12 = arith.addf %7, %11 : vector<2x32xf32>
    %c0_4 = arith.constant 0 : index
    %c64 = arith.constant 64 : index
    %13 = vector.load %arg1[%c0_4, %c64] : memref<2x256xf32, #tpu.memory_space<vmem>>, vector<2x32xf32>
    %14 = arith.mulf %13, %12 : vector<2x32xf32>
    %15 = arith.addf %10, %14 : vector<2x32xf32>
    %16 = arith.mulf %13, %0 : vector<2x32xf32>
    %17 = arith.addf %12, %16 : vector<2x32xf32>
    %c0_5 = arith.constant 0 : index
    %c96 = arith.constant 96 : index
    %18 = vector.load %arg1[%c0_5, %c96] : memref<2x256xf32, #tpu.memory_space<vmem>>, vector<2x32xf32>
    %19 = arith.mulf %18, %17 : vector<2x32xf32>
    %20 = arith.addf %15, %19 : vector<2x32xf32>
    %21 = arith.mulf %18, %0 : vector<2x32xf32>
    %22 = arith.addf %17, %21 : vector<2x32xf32>
    %c0_6 = arith.constant 0 : index
    %c128 = arith.constant 128 : index
    %23 = vector.load %arg1[%c0_6, %c128] : memref<2x256xf32, #tpu.memory_space<vmem>>, vector<2x32xf32>
    %24 = arith.mulf %23, %22 : vector<2x32xf32>
    %25 = arith.addf %20, %24 : vector<2x32xf32>
    %26 = arith.mulf %23, %0 : vector<2x32xf32>
    %27 = arith.addf %22, %26 : vector<2x32xf32>
    %c0_7 = arith.constant 0 : index
    %c160 = arith.constant 160 : index
    %28 = vector.load %arg1[%c0_7, %c160] : memref<2x256xf32, #tpu.memory_space<vmem>>, vector<2x32xf32>
    %29 = arith.mulf %28, %27 : vector<2x32xf32>
    %30 = arith.addf %25, %29 : vector<2x32xf32>
    %31 = arith.mulf %28, %0 : vector<2x32xf32>
    %32 = arith.addf %27, %31 : vector<2x32xf32>
    %c0_8 = arith.constant 0 : index
    %c192 = arith.constant 192 : index
    %33 = vector.load %arg1[%c0_8, %c192] : memref<2x256xf32, #tpu.memory_space<vmem>>, vector<2x32xf32>
    %34 = arith.mulf %33, %32 : vector<2x32xf32>
    %35 = arith.addf %30, %34 : vector<2x32xf32>
    %36 = arith.mulf %33, %0 : vector<2x32xf32>
    %37 = arith.addf %32, %36 : vector<2x32xf32>
    %c0_9 = arith.constant 0 : index
    %c224 = arith.constant 224 : index
    %38 = vector.load %arg1[%c0_9, %c224] : memref<2x256xf32, #tpu.memory_space<vmem>>, vector<2x32xf32>
    %39 = arith.mulf %38, %37 : vector<2x32xf32>
    %40 = arith.addf %35, %39 : vector<2x32xf32>
    %cst_10 = arith.constant dense<0.000000e+00> : vector<2xf32>
    %41 = vector.multi_reduction <add>, %40, %cst_10 [1] : vector<2x32xf32> to vector<2xf32>
    %42 = vector.shape_cast %41 : vector<2xf32> to vector<2x1xf32>
    %c0_11 = arith.constant 0 : index
    %c0_12 = arith.constant 0 : index
    %43 = vector.load %arg2[%c0_11, %c0_12] : memref<2x1xf32, #tpu.memory_space<vmem>>, vector<2x1xf32>
    tpu.vector_store %arg2[%c0_11, %c0_12], %42 {strides = array<i32>} : memref<2x1xf32, #tpu.memory_space<vmem>>, vector<2x1xf32>,
    return
  }
  func.func @transform_0(%arg0: i32) -> (i32, i32) {
    %c0_i32 = arith.constant 0 : i32
    %c0_i32_0 = arith.constant 0 : i32
    return %arg0, %c0_i32 : i32, i32
  }
  func.func @transform_1(%arg0: i32) -> (i32, i32) {
    %c0_i32 = arith.constant 0 : i32
    %c0_i32_0 = arith.constant 0 : i32
    return %arg0, %c0_i32 : i32, i32
  }
}

</mosaic_0001>

<bundles_post_ra>
// kernel: tpu_custom_call.1
= control target key start
LH: loop header
LB: loop body
LE: loop exit
PB: predicated region body
PF: predicated region fallthrough
CT: control target
= control target key end

     0   :  { %6 = vsyncpa [#allocation3], 0  ;;  %s149_s6 = smov [#allocation2]   ;;  %s195_s0 = inlined_call_operand.hbm [shape: f32[2,256], index: 0, kind: input, shape index: {}]   ;;  %s196_s1 = inlined_call_operand.vmem [shape: f32[2,1], index: 1, kind: output, shape index: {}]  }
   0x1   :  { %s13_s7 = sshll.u32 %s149_s6, 4  ;;  %s125_s10 = scalar_lea.hbm %s195_s0, 64  ;;  %s14_s7 = int_to_ptr.vmem [resolvable:$true] %s13_s7 }
   0x2   :  { %p126_p0 = scmp.ne.s32.totalorder %s195_s0, %s125_s10  ;;  %p129_p1 = scmp.lt.u32.totalorder %s125_s10, %s195_s0 }
   0x4   :  { %p131_p2 = pnand %p129_p1, %p126_p0 }
   0x6   :  { %134 = shalt.err (!%p131_p2)
}
   0x7   :  { %s135_s15 = scalar_lea.vmem %s14_s7, 64  ;;  %p140_p4 = scmp.lt.s32.totalorder %s14_s7, %s14_s7 }
   0x8   :  { %p136_p3 = scmp.ne.s32.totalorder %s14_s7, %s135_s15  ;;  %p141_p5 = scmp.lt.s32.totalorder %s135_s15, %s135_s15 }
   0xa   :  { %p142_p6 = por %p141_p5, %p140_p4 }
   0xc   :  { %p143_p7 = pnand %p142_p6, %p136_p3 }
   0xe   :  { %146 = shalt.err (!%p143_p7)
}
   0xf   :  { %16 = dma.hbm_to_vmem [thread:$0]  %s195_s0, 64, %s14_s7, [#allocation3]  }
  0x10   :  { %147 = dma.done.wait [#allocation3], 64  }
  0x11   :  { %148 = vsyncadd [#allocation3], 4294967232  ;;  %v20_v0 = vld [vmem:[#allocation2] sm:$0x3]  ;;  %s150_s18 = smov 96   ;;  %s151_s19 = smov 32  }
  0x12   :  { %35 = vrot.lane.b32.xlu0 %v20_v0, %s150_s18  ;;  %63 = vrot.lane.b32.xlu1 %v20_v0, %s151_s19  ;;  %v67_v1 = vld [vmem:[#allocation2 + $0x2] sm:$0x3]  ;;  %s152_s20 = smov 64   ;;  %v21_v25 = vmul.f32 0.0, %v20_v0  ;;  %vm110_vm0 = vcmask 254976   ;;  %vm114_vm1 = vcmask 1024  }
  0x16   :  { %49 = vrot.lane.b32.xlu0 %v20_v0, %s152_s20  ;;  %82 = vrot.lane.b32.xlu1 %v67_v1, %s150_s18 }
  0x1a   :  { %96 = vrot.lane.b32.xlu0 %v67_v1, %s152_s20  ;;  %25 = vrot.lane.b32.xlu1 %v20_v0, %s151_s19 }
  0x84   :  { %v36_v2 = vpop.permute.xlu0 %35  ;;  %v64_v3 = vpop.permute.xlu1 %63 }
  0x85   :  { %v38_v4 = vadd.f32 %v36_v2, %v20_v0 }
  0x87   :  { %40 = vrot.lane.b32.xlu0 %v38_v4, %s152_s20 }
  0x88   :  { %v50_v5 = vpop.permute.xlu0 %49  ;;  %v83_v7 = vpop.permute.xlu1 %82 }
  0x89   :  { %v52_v6 = vadd.f32 %v50_v5, %v38_v4 }
  0x8b   :  { %v66_v8 = vadd.f32 %v64_v3, %v52_v6  ;;  %54 = vrot.lane.b32.xlu1 %v52_v6, %s150_s18 }
  0x8c   :  { %v97_v10 = vpop.permute.xlu0 %96  ;;  %v26_v11 = vpop.permute.xlu1 %25 }
  0x8d   :  { %v70_v9 = vadd.f32 %v67_v1, %v66_v8  ;;  %v28_v14 = vmul.f32 %v26_v11, %v20_v0  ;;  %v68_v31 = vmul.f32 %v67_v1, %v66_v8 }
  0x8f   :  { %v85_v12 = vadd.f32 %v83_v7, %v70_v9  ;;  %72 = vrot.lane.b32.xlu0 %v70_v9, %s151_s19 }
  0x91   :  { %v99_v13 = vadd.f32 %v97_v10, %v85_v12  ;;  %87 = vrot.lane.b32.xlu1 %v85_v12, %s152_s20 }
  0x93   :  { %101 = vrot.lane.b32.xlu0 %v99_v13, %s150_s18 }
  0x95   :  { %30 = vrot.lane.b32.xlu1 %v28_v14, %s150_s18 }
  0xf9   :  { %v41_v15 = vpop.permute.xlu0 %40 }
  0xfa   :  { %v43_v16 = vmul.f32 %v41_v15, %v20_v0 }
  0xfc   :  { %45 = vrot.lane.b32.xlu0 %v43_v16, %s152_s20 }
  0xfd   :  { %v55_v17 = vpop.permute.xlu1 %54 }
  0xfe   :  { %v57_v18 = vmul.f32 %v55_v17, %v20_v0 }
 0x100   :  { %59 = vrot.lane.b32.xlu1 %v57_v18, %s151_s19 }
 0x101   :  { %v73_v19 = vpop.permute.xlu0 %72 }
 0x102   :  { %v75_v20 = vmul.f32 %v73_v19, %v67_v1 }
 0x103   :  { %v88_v21 = vpop.permute.xlu1 %87 }
 0x104   :  { %v90_v22 = vmul.f32 %v88_v21, %v67_v1  ;;  %77 = vrot.lane.b32.xlu0 %v75_v20, %s150_s18 }
 0x105   :  { %v102_v23 = vpop.permute.xlu0 %101 }
 0x106   :  { %v104_v24 = vmul.f32 %v102_v23, %v67_v1  ;;  %92 = vrot.lane.b32.xlu1 %v90_v22, %s152_s20 }
 0x107   :  { %v31_v26 = vpop.permute.xlu1 %30 }
 0x108   :  { %106 = vrot.lane.b32.xlu0 %v104_v24, %s151_s19  ;;  %v33_v27 = vadd.f32 %v31_v26, %v21_v25 }
 0x16e   :  { %v46_v28 = vpop.permute.xlu0 %45 }
 0x16f   :  { %v48_v29 = vadd.f32 %v46_v28, %v33_v27 }
 0x172   :  { %v60_v30 = vpop.permute.xlu1 %59 }
 0x173   :  { %v62_v32 = vadd.f32 %v60_v30, %v48_v29 }
 0x175   :  { %v69_v33 = vadd.f32 %v68_v31, %v62_v32 }
 0x176   :  { %v78_v34 = vpop.permute.xlu0 %77 }
 0x177   :  { %v80_v35 = vadd.f32 %v78_v34, %v69_v33 }
 0x178   :  { %v93_v36 = vpop.permute.xlu1 %92 }
 0x179   :  { %v95_v37 = vadd.f32 %v93_v36, %v80_v35 }
 0x17a   :  { %v107_v38 = vpop.permute.xlu0 %106 }
 0x17b   :  { %v109_v39 = vadd.f32 %v107_v38, %v95_v37 }
 0x17d   :  { %v111_v40 = vsel %vm110_vm0, %v109_v39, 0.0 }
 0x17e   :  { %112 = vadd.xlane.f32.xlu1 %v111_v40 }
 0x20b   :  { %v113_v41 = vpop.xlane.xlu1 %112 }
 0x20c   :  { %115 = vst.msk [vmem:[%s196_s1] sm:$0x3] %vm114_vm1, %v113_v41 }
 0x20d   :  { %120 = vsyncpa [#allocation3], 1 }

</bundles_post_ra>
